<compile_context>
chip_gen: v5e
topology: v5e:2x2
jax: 0.10.0
libtpu: 0.0.40
codegen_flags: <defaults>
</compile_context>

<pallas_src>
import functools

import jax
import jax.numpy as jnp
from jax.experimental import pallas as pl
from jax.experimental.pallas import tpu as pltpu


# ----------------------------- host-side helpers (glue) -----------------------------

def bilinear_matrix(out_size: int, in_size: int) -> jnp.ndarray:
    """Interpolation matrix M (out_size, in_size) s.t. y = M @ x is 1-D bilinear
    resampling with align_corners=True (PyTorch F.interpolate semantics)."""
    denom = max(out_size - 1, 1)
    src = jnp.arange(out_size, dtype=jnp.float32) * (in_size - 1) / denom
    i0 = jnp.clip(jnp.floor(src).astype(jnp.int32), 0, in_size - 1)
    i1 = jnp.clip(i0 + 1, 0, in_size - 1)
    frac = src - i0.astype(jnp.float32)
    m = jnp.zeros((out_size, in_size), jnp.float32)
    rows = jnp.arange(out_size)
    m = m.at[rows, i0].add(1.0 - frac)
    m = m.at[rows, i1].add(frac)
    return m


def shift_rows(m: jnp.ndarray, s: int) -> jnp.ndarray:
    """Row p of result = row (p + s) of m, zero-filled when out of range."""
    if s == 0:
        return m
    z = jnp.zeros((abs(s), m.shape[1]), m.dtype)
    if s > 0:
        return jnp.concatenate([m[s:], z], axis=0)
    return jnp.concatenate([z, m[:s]], axis=0)


def _choose_nb(n: int, ho: int) -> int:
    """Images per grid step: target M = nb*Ho ~ 128, keep >= 2 grid steps if N >= 2 (v7x 2 TCs)."""
    nb = max(1, min(n, max(1, 128 // ho)))
    if n >= 2:
        nb = min(nb, (n + 1) // 2)
    return max(nb, 1)


# ----------------------------------- Pallas kernel -----------------------------------

def upconv_kernel(ah_ref, x_ref, r_ref, b_ref, o_ref, span_ref, *, nb, H, Ho, CWp):
    # ah_ref : (3*Ho, H)        bf16 - three row-shifted row-interp matrices, stacked on sublanes
    # x_ref  : (H, nb*CWp)      bf16 - nb images, channels packed into lanes, zero-padded to CWp
    # r_ref  : (3*CWp, O*Wo)    bf16 - conv weights folded into col-interp matrices, K-stacked
    # b_ref  : (1, O*Wo)        f32  - bias repeated Wo times per output channel
    # o_ref  : (nb*Ho, O*Wo)    f32  - lane-dense output slab for this block of images
    # span_ref: (nb*Ho, 3*CWp)  bf16 VMEM scratch

    # One row-interp matmul for all 3 conv-row taps and all nb images of this grid step:
    #   (3*Ho, H) @ (H, nb*CWp) -> (3*Ho, nb*CWp), f32 accumulate.
    spans = jnp.dot(ah_ref[...], x_ref[...], preferred_element_type=jnp.float32)
    spans = spans.astype(jnp.bfloat16)

    # Rearrange (dy, image) tiles into the (nb*Ho, 3*CWp) scratch so the full contraction is a
    # single MXU matmul with M = nb*Ho and K = 3*CWp.  Offsets are multiples of (Ho, CWp) =
    # (16k sublanes, 128k lanes): aligned, unmasked stores; slices land on tile boundaries.
    for i in range(nb):            # static unroll, nb <= 4 at these sizes
        for dy in range(3):
            span_ref[pl.ds(i * Ho, Ho), pl.ds(dy * CWp, CWp)] = (
                spans[dy * Ho:(dy + 1) * Ho, i * CWp:(i + 1) * CWp])

    # Single K-merged contraction: (nb*Ho, 3*CWp) @ (3*CWp, O*Wo), f32 accumulation in the MXU.
    acc = jnp.dot(span_ref[...], r_ref[...], preferred_element_type=jnp.float32)
    o_ref[...] = (acc + b_ref[...]).astype(o_ref.dtype)


# ------------------------------------- wrapper ---------------------------------------

@jax.jit
def upconv(x, w, b):
    """x: (N, C, H, W) f32, w: (O, C, 3, 3) f32, b: (O,) f32 -> (N, O, 2H, 2W) f32."""
    N, C, H, W = x.shape
    O = w.shape[0]
    Ho, Wo = 2 * H, 2 * W          # forward hard-codes scale_factor=2
    CW = C * W
    CWp = -(-CW // 128) * 128      # pad channel*width lanes to a multiple of 128 (lane-dense)
    nb = _choose_nb(N, Ho)
    G = -(-N // nb)
    N_pad = G * nb

    Ah = bilinear_matrix(Ho, H)    # (Ho, H)
    Aw = bilinear_matrix(Wo, W)    # (Wo, W)
    ah_all = jnp.concatenate([shift_rows(Ah, dy - 1) for dy in range(3)], axis=0)   # (3*Ho, H)
    awt_stack = jnp.stack([shift_rows(Aw, dx - 1).T for dx in range(3)])            # (3, W, Wo)

    # Fold conv weights into the column-interp matrices (f32 build):
    #   R[dy, c*W + w_, o*Wo + q] = sum_dx w[o, c, dy, dx] * AwT_dx[w_, q]
    # then zero-pad each dy block's K rows to CWp and stack along K for the single matmul.
    R = jnp.einsum('ocyx,xwq->ycwoq', w.astype(jnp.float32), awt_stack)
    R = R.reshape(3, CW, O * Wo)
    R = jnp.pad(R, ((0, 0), (0, CWp - CW), (0, 0)))                                 # (3, CWp, O*Wo)
    R = R.reshape(3 * CWp, O * Wo)

    bias_row = jnp.repeat(b.astype(jnp.float32), Wo)[None, :]                       # (1, O*Wo)

    # Input layout plumbing (wrapper-side, pure layout):
    #   xb[g*H + h, i*CWp + c*W + w_] = x[g*nb + i, c, h, w_], zero-padded on batch and lanes.
    xp = jnp.transpose(x, (0, 2, 1, 3)).reshape(N, H, CW)
    xp = jnp.pad(xp, ((0, N_pad - N), (0, 0), (0, CWp - CW)))
    xp = xp.reshape(G, nb, H, CWp).transpose(0, 2, 1, 3).reshape(G * H, nb * CWp)

    ah_bf = ah_all.astype(jnp.bfloat16)
    r_bf = R.astype(jnp.bfloat16)
    x_bf = xp.astype(jnp.bfloat16)

    kernel = functools.partial(upconv_kernel, nb=nb, H=H, Ho=Ho, CWp=CWp)

    flops = G * (2 * (3 * Ho) * H * (nb * CWp) + 2 * (nb * Ho) * (3 * CWp) * (O * Wo))
    bytes_accessed = (x_bf.size * 2 + ah_bf.size * 2 + r_bf.size * 2
                      + bias_row.size * 4 + N_pad * Ho * O * Wo * 4)

    out_packed = pl.pallas_call(
        kernel,
        out_shape=jax.ShapeDtypeStruct((N_pad * Ho, O * Wo), jnp.float32),
        grid=(G,),
        in_specs=[
            pl.BlockSpec((3 * Ho, H), lambda n: (0, 0)),          # row-interp matrices (invariant)
            pl.BlockSpec((H, nb * CWp), lambda n: (n, 0)),        # nb images per step
            pl.BlockSpec((3 * CWp, O * Wo), lambda n: (0, 0)),    # folded conv weights (invariant)
            pl.BlockSpec((1, O * Wo), lambda n: (0, 0)),          # bias (invariant)
        ],
        out_specs=pl.BlockSpec((nb * Ho, O * Wo), lambda n: (n, 0)),
        scratch_shapes=[pltpu.VMEM((nb * Ho, 3 * CWp), jnp.bfloat16)],
        compiler_params=pltpu.CompilerParams(dimension_semantics=("parallel",)),
        cost_estimate=pl.CostEstimate(flops=flops, transcendentals=0,
                                      bytes_accessed=bytes_accessed),
    )(ah_bf, x_bf, r_bf, bias_row)

    # Layout plumbing back to NCHW: (N_pad*Ho, O*Wo) -> (N, O, Ho, Wo).
    out = out_packed.reshape(N_pad, Ho, O, Wo).transpose(0, 2, 1, 3)
    return out[:N]


# ------------------------------ pure-JAX reference (check) ---------------------------

def upconv_reference(x, w, b):
    N, C, H, W = x.shape
    Ho, Wo = 2 * H, 2 * W
    Ah = bilinear_matrix(Ho, H)
    Aw = bilinear_matrix(Wo, W)
    up = jnp.einsum('ph,nchw,qw->ncpq', Ah, x, Aw, precision='highest')
    out = jax.lax.conv_general_dilated(
        up, w, window_strides=(1, 1), padding=((1, 1), (1, 1)),
        dimension_numbers=('NCHW', 'OIHW', 'NCHW'), precision='highest')
    return out + b[None, :, None, None]


# --------------------------------------- main ----------------------------------------

if __name__ == "__main__":
    key = jax.random.PRNGKey(0)
    kx, kw, kb = jax.random.split(key, 3)

    N, INC, OUTC, H, W = 2, 4, 8, 16, 16
    x = jax.random.normal(kx, (N, INC, H, W), dtype=jnp.float32)
    # deterministic synthetic parameters (Conv2d(inc, outc, 3) shapes)
    conv_w = jax.random.normal(kw, (OUTC, INC, 3, 3), dtype=jnp.float32) * 0.1
    conv_b = jax.random.normal(kb, (OUTC,), dtype=jnp.float32) * 0.1

    out = jax.block_until_ready(upconv(x, conv_w, conv_b))

    ref = upconv_reference(x, conv_w, conv_b)
    assert out.shape == (N, OUTC, 2 * H, 2 * W), out.shape
    max_err = float(jnp.max(jnp.abs(out - ref)))
    # bf16 MXU operands with f32 accumulation: 5e-2 is a meaningful bound at these magnitudes.
    assert max_err < 5e-2, f"max abs error too large: {max_err}"

    print("KERNEL_OK")
</pallas_src>

<mosaic_0001>
module attributes {stable_mosaic.version = 11 : i64} {
  func.func @upconv_kernel(%arg0: i32, %arg1: memref<96x16xbf16, #tpu.memory_space<vmem>>, %arg2: memref<16x128xbf16, #tpu.memory_space<vmem>>, %arg3: memref<384x256xbf16, #tpu.memory_space<vmem>>, %arg4: memref<1x256xf32, #tpu.memory_space<vmem>>, %arg5: memref<32x256xf32, #tpu.memory_space<vmem>>, %arg6: memref<32x384xbf16, #tpu.memory_space<vmem>>) attributes {dimension_semantics = [#tpu.dimension_semantics<parallel>], iteration_bounds = array<i64: 2>, scalar_prefetch = 0 : i64, scratch_operands = 1 : i64, tpu.core_type = #tpu.core_type<tc>, window_params = [{pipeline_mode = #tpu.pipeline_mode<synchronous>, transform_indices = @transform_0, window_bounds = array<i64: 96, 16>}, {transform_indices = @transform_1, window_bounds = array<i64: 16, 128>}, {pipeline_mode = #tpu.pipeline_mode<synchronous>, transform_indices = @transform_2, window_bounds = array<i64: 384, 256>}, {pipeline_mode = #tpu.pipeline_mode<synchronous>, transform_indices = @transform_3, window_bounds = array<i64: 1, 256>}, {transform_indices = @transform_4, window_bounds = array<i64: 32, 256>}]} {
    %c0 = arith.constant 0 : index
    %c0_0 = arith.constant 0 : index
    %0 = vector.load %arg1[%c0, %c0_0] : memref<96x16xbf16, #tpu.memory_space<vmem>>, vector<96x16xbf16>
    %c0_1 = arith.constant 0 : index
    %c0_2 = arith.constant 0 : index
    %1 = vector.load %arg2[%c0_1, %c0_2] : memref<16x128xbf16, #tpu.memory_space<vmem>>, vector<16x128xbf16>
    %cst = arith.constant dense<0.000000e+00> : vector<96x128xf32>
    %2 = tpu.matmul %0, %1, %cst {dimension_numbers = #tpu.dot_dimension_numbers<[1], [0], [0], [1], [0, 0, 1, 1], [], []>} : vector<96x16xbf16>, vector<16x128xbf16>, vector<96x128xf32> -> vector<96x128xf32>
    %3 = arith.truncf %2 : vector<96x128xf32> to vector<96x128xbf16>
    %4 = vector.extract_strided_slice %3 {offsets = [0, 0], sizes = [32, 128], strides = [1, 1]} : vector<96x128xbf16> to vector<32x128xbf16>
    %c0_3 = arith.constant 0 : index
    %c0_4 = arith.constant 0 : index
    %5 = vector.load %arg6[%c0_3, %c0_4] : memref<32x384xbf16, #tpu.memory_space<vmem>>, vector<32x128xbf16>
    tpu.vector_store %arg6[%c0_3, %c0_4], %4 {strides = array<i32>} : memref<32x384xbf16, #tpu.memory_space<vmem>>, vector<32x128xbf16>,
    %6 = vector.extract_strided_slice %3 {offsets = [32, 0], sizes = [32, 128], strides = [1, 1]} : vector<96x128xbf16> to vector<32x128xbf16>
    %c0_5 = arith.constant 0 : index
    %c128 = arith.constant 128 : index
    %7 = vector.load %arg6[%c0_5, %c128] : memref<32x384xbf16, #tpu.memory_space<vmem>>, vector<32x128xbf16>
    tpu.vector_store %arg6[%c0_5, %c128], %6 {strides = array<i32>} : memref<32x384xbf16, #tpu.memory_space<vmem>>, vector<32x128xbf16>,
    %8 = vector.extract_strided_slice %3 {offsets = [64, 0], sizes = [32, 128], strides = [1, 1]} : vector<96x128xbf16> to vector<32x128xbf16>
    %c0_6 = arith.constant 0 : index
    %c256 = arith.constant 256 : index
    %9 = vector.load %arg6[%c0_6, %c256] : memref<32x384xbf16, #tpu.memory_space<vmem>>, vector<32x128xbf16>
    tpu.vector_store %arg6[%c0_6, %c256], %8 {strides = array<i32>} : memref<32x384xbf16, #tpu.memory_space<vmem>>, vector<32x128xbf16>,
    %c0_7 = arith.constant 0 : index
    %c0_8 = arith.constant 0 : index
    %10 = vector.load %arg6[%c0_7, %c0_8] : memref<32x384xbf16, #tpu.memory_space<vmem>>, vector<32x384xbf16>
    %c0_9 = arith.constant 0 : index
    %c0_10 = arith.constant 0 : index
    %11 = vector.load %arg3[%c0_9, %c0_10] : memref<384x256xbf16, #tpu.memory_space<vmem>>, vector<384x256xbf16>
    %cst_11 = arith.constant dense<0.000000e+00> : vector<32x256xf32>
    %12 = tpu.matmul %10, %11, %cst_11 {dimension_numbers = #tpu.dot_dimension_numbers<[1], [0], [0], [1], [0, 0, 1, 1], [], []>} : vector<32x384xbf16>, vector<384x256xbf16>, vector<32x256xf32> -> vector<32x256xf32>
    %c0_12 = arith.constant 0 : index
    %c0_13 = arith.constant 0 : index
    %13 = vector.load %arg4[%c0_12, %c0_13] : memref<1x256xf32, #tpu.memory_space<vmem>>, vector<1x256xf32>
    %14 = vector.broadcast %13 : vector<1x256xf32> to vector<32x256xf32>
    %15 = arith.addf %12, %14 : vector<32x256xf32>
    %c0_14 = arith.constant 0 : index
    %c0_15 = arith.constant 0 : index
    %16 = vector.load %arg5[%c0_14, %c0_15] : memref<32x256xf32, #tpu.memory_space<vmem>>, vector<32x256xf32>
    tpu.vector_store %arg5[%c0_14, %c0_15], %15 {strides = array<i32>} : memref<32x256xf32, #tpu.memory_space<vmem>>, vector<32x256xf32>,
    return
  }
  func.func @transform_0(%arg0: i32) -> (i32, i32) {
    %c0_i32 = arith.constant 0 : i32
    %c0_i32_0 = arith.constant 0 : i32
    %c0_i32_1 = arith.constant 0 : i32
    return %c0_i32, %c0_i32_0 : i32, i32
  }
  func.func @transform_1(%arg0: i32) -> (i32, i32) {
    %c0_i32 = arith.constant 0 : i32
    %c0_i32_0 = arith.constant 0 : i32
    return %arg0, %c0_i32 : i32, i32
  }
  func.func @transform_2(%arg0: i32) -> (i32, i32) {
    %c0_i32 = arith.constant 0 : i32
    %c0_i32_0 = arith.constant 0 : i32
    %c0_i32_1 = arith.constant 0 : i32
    return %c0_i32, %c0_i32_0 : i32, i32
  }
  func.func @transform_3(%arg0: i32) -> (i32, i32) {
    %c0_i32 = arith.constant 0 : i32
    %c0_i32_0 = arith.constant 0 : i32
    %c0_i32_1 = arith.constant 0 : i32
    return %c0_i32, %c0_i32_0 : i32, i32
  }
  func.func @transform_4(%arg0: i32) -> (i32, i32) {
    %c0_i32 = arith.constant 0 : i32
    %c0_i32_0 = arith.constant 0 : i32
    return %arg0, %c0_i32 : i32, i32
  }
}

</mosaic_0001>

<bundles_post_ra>
// kernel: upconv.1
= control target key start
LH: loop header
LB: loop body
LE: loop exit
PB: predicated region body
PF: predicated region fallthrough
CT: control target
= control target key end

     0   :  { %s1238_s15 = smov 0   ;;  %s1598_s0 = inlined_call_operand.vmem [shape: bf16[96,16], index: 0, kind: input, shape index: {}]   ;;  %s1599_s1 = inlined_call_operand.vmem [shape: bf16[32,128], index: 1, kind: input, shape index: {}]   ;;  %s1600_s2 = inlined_call_operand.vmem [shape: bf16[384,256], index: 2, kind: input, shape index: {}]   ;;  %s1601_s3 = inlined_call_operand.vmem [shape: f32[1,256], index: 3, kind: input, shape index: {}]   ;;  %s1602_s4 = inlined_call_operand.vmem [shape: f32[64,256], index: 4, kind: output, shape index: {}]  }
   0x1 LB: > { %s850_s16 = sadd.s32 4294967295, %s1211_s15   ;;  %p854_p0 = scmp.ge.s32.totalorder %s1211_s15, 1  ;;  %s1211_s15 = sphi %s1238_s15, %s14_s15  }
   0x2   : > { %p163_p1 = scmp.lt.s32.totalorder %s1211_s15, 3 }
   0x4   : > { %p164_p2 = pnand %p854_p0, %p163_p1 }
   0x5   : > { %s855_s17 = sshll.u32 (!%p164_p2), %s850_s16, 1  ;;  %s857_s8 = sshll.u32 (!%p164_p2), %s850_s16, 2 }
   0x6   : > { %167 = sbr.rel (%p164_p2) target bundleno = 421 (0x1a5), region = 36  ;;  %p191_p3 = scmp.lt.s32.totalorder (!%p164_p2), %s855_s17, 3 }
   0x7   : > { %p197_p4 = scmp.lt.s32.totalorder (!%p164_p2), %s857_s8, 7 }
   0xb   : > { %s1604_s17 = smov (!%p191_p3, %s855_s17), 3  ;;  %v1113_v1 = vld [vmem:[%s1598_s0] sm:$0xff]  ;;  %vm254_vm0 = vcmask 130048   ;;  %v1114_v2 = vld [vmem:[%s1598_s0 + $0x8] sm:$0xff]  ;;  %v1115_v3 = vld [vmem:[%s1598_s0 + $0x10] sm:$0xff]  ;;  %s1606_s8 = smov (!%p197_p4, %s857_s8), 7 }
   0xc   : > { %s856_s18 = sshll.u32 %s1604_s17, 2  ;;  %v1116_v4 = vld [vmem:[%s1598_s0 + $0x18] sm:$0xff]  ;;  %v1117_v5 = vld [vmem:[%s1598_s0 + $0x20] sm:$0xff]  ;;  %v1118_v6 = vld [vmem:[%s1598_s0 + $0x28] sm:$0xff]  ;;  %s1112_s11 = sshll.u32 %s1606_s8, 4 }
   0xd   : > { %s194_s21 = scalar_lea.vmem %s1599_s1, %s856_s18  ;;  %v976_v7 = vld [vmem:[%s1600_s2 + $0x70] sm:$0xf]  ;;  %v1141_v8 = vld [vmem:[%s1600_s2 + $0x74] sm:$0xf0]  ;;  %v968_v10 = vld [vmem:[%s1600_s2 + $0x60] sm:$0xf]  ;;  %s1585_s14 = scalar_lea.vmem %s1602_s4, %s1112_s11 }
   0xe   : > { %v1119_v0 = vld [vmem:[%s194_s21] sm:$0xff]  ;;  %v977_v9 = vor.u32 %v1141_v8, %v976_v7  ;;  %v1139_v11 = vld [vmem:[%s1600_s2 + $0x64] sm:$0xf0]  ;;  %v960_v13 = vld [vmem:[%s1600_s2 + $0x50] sm:$0xf] }
   0xf   : > { %280 = vmatpush.bf16.msra.mxu0 %v1119_v0  ;;  %v969_v12 = vor.u32 %v1139_v11, %v968_v10  ;;  %v1137_v14 = vld [vmem:[%s1600_s2 + $0x54] sm:$0xf0]  ;;  %v952_v16 = vld [vmem:[%s1600_s2 + $0x40] sm:$0xf]  ;;  %v1135_v17 = vld [vmem:[%s1600_s2 + $0x44] sm:$0xf0] }
  0x10   : > { %670 = vmatpush.bf16.msra.mxu1 %v977_v9  ;;  %v961_v15 = vor.u32 %v1137_v14, %v960_v13  ;;  %v953_v18 = vor.u32 %v1135_v17, %v952_v16  ;;  %v944_v19 = vld [vmem:[%s1600_s2 + $0x30] sm:$0xf]  ;;  %v1133_v20 = vld [vmem:[%s1600_s2 + $0x34] sm:$0xf0]  ;;  %v936_v22 = vld [vmem:[%s1600_s2 + $0x20] sm:$0xf] }
  0x11   : > { %v945_v21 = vor.u32 %v1133_v20, %v944_v19  ;;  %v1131_v23 = vld [vmem:[%s1600_s2 + $0x24] sm:$0xf0]  ;;  %v928_v26 = vld [vmem:[%s1600_s2 + $0x10] sm:$0xf]  ;;  %v1129_v27 = vld [vmem:[%s1600_s2 + $0x14] sm:$0xf0] }
  0x12   : > { %888 = vmatmul.msk.bf16.vlgmr.msra.gmra.mxu0 %vm254_vm0, %v1113_v1  ;;  %v937_v25 = vor.u32 %v1131_v23, %v936_v22  ;;  %v929_v28 = vor.u32 %v1129_v27, %v928_v26  ;;  %v920_v29 = vld [vmem:[%s1600_s2] sm:$0xf]  ;;  %v1127_v30 = vld [vmem:[%s1600_s2 + $0x4] sm:$0xf0]  ;;  %v1140_v34 = vld [vmem:[%s1600_s2 + $0x74] sm:$0xf] }
  0x13   : > { %v921_v32 = vor.u32 %v1127_v30, %v920_v29  ;;  %v978_v35 = vld [vmem:[%s1600_s2 + $0x78] sm:$0xf0]  ;;  %v1138_v37 = vld [vmem:[%s1600_s2 + $0x64] sm:$0xf]  ;;  %v970_v38 = vld [vmem:[%s1600_s2 + $0x68] sm:$0xf0] }
  0x14   : > { %671 = vmatpush.bf16.msra.mxu1 %v969_v12  ;;  %v981_v36 = vor.u32 %v1140_v34, %v978_v35  ;;  %v973_v40 = vor.u32 %v1138_v37, %v970_v38  ;;  %v1040_v41 = vld [vmem:[%s1600_s2 + $0xf0] sm:$0xf]  ;;  %v1157_v42 = vld [vmem:[%s1600_s2 + $0xf4] sm:$0xf0]  ;;  %v1136_v46 = vld [vmem:[%s1600_s2 + $0x54] sm:$0xf] }
  0x15   : > { %v1104_v43 = vld [vmem:[%s1600_s2 + $0x170] sm:$0xf]  ;;  %v1041_v44 = vor.u32 %v1157_v42, %v1040_v41  ;;  %v1173_v45 = vld [vmem:[%s1600_s2 + $0x174] sm:$0xf0]  ;;  %v962_v47 = vld [vmem:[%s1600_s2 + $0x58] sm:$0xf0] }
  0x16   : > { %v1105_v48 = vor.u32 %v1173_v45, %v1104_v43  ;;  %v965_v49 = vor.u32 %v1136_v46, %v962_v47  ;;  %v1032_v50 = vld [vmem:[%s1600_s2 + $0xe0] sm:$0xf]  ;;  %v1155_v51 = vld [vmem:[%s1600_s2 + $0xe4] sm:$0xf0]  ;;  %v1134_v56 = vld [vmem:[%s1600_s2 + $0x44] sm:$0xf] }
  0x17   : > { %689 = vmatpush.bf16.msra.mxu2 %v1041_v44  ;;  %v1096_v52 = vld [vmem:[%s1600_s2 + $0x160] sm:$0xf]  ;;  %v1033_v54 = vor.u32 %v1155_v51, %v1032_v50  ;;  %v1171_v55 = vld [vmem:[%s1600_s2 + $0x164] sm:$0xf0]  ;;  %v954_v57 = vld [vmem:[%s1600_s2 + $0x48] sm:$0xf0] }
  0x18   : > { %672 = vmatpush.bf16.msra.mxu1 %v961_v15  ;;  %708 = vmatpush.bf16.msra.mxu3 %v1105_v48  ;;  %v1097_v59 = vor.u32 %v1171_v55, %v1096_v52  ;;  %v957_v60 = vor.u32 %v1134_v56, %v954_v57  ;;  %v1024_v61 = vld [vmem:[%s1600_s2 + $0xd0] sm:$0xf]  ;;  %v1153_v62 = vld [vmem:[%s1600_s2 + $0xd4] sm:$0xf0]  ;;  %v1151_v7 = vld [vmem:[%s1600_s2 + $0xc4] sm:$0xf0] }
  0x19   : > { %v1025_v63 = vor.u32 %v1153_v62, %v1024_v61  ;;  %v1088_v0 = vld [vmem:[%s1600_s2 + $0x150] sm:$0xf]  ;;  %v1169_v1 = vld [vmem:[%s1600_s2 + $0x154] sm:$0xf0]  ;;  %v1080_v8 = vld [vmem:[%s1600_s2 + $0x140] sm:$0xf] }
  0x1a   : > { %v1167_v11 = vld [vmem:[%s1600_s2 + $0x144] sm:$0xf0]  ;;  %v1130_v12 = vld [vmem:[%s1600_s2 + $0x24] sm:$0xf]  ;;  %v938_v13 = vld [vmem:[%s1600_s2 + $0x28] sm:$0xf0] }
  0x1b   : > { %690 = vmatpush.bf16.msra.mxu2 %v1033_v54  ;;  %v1081_v15 = vor.u32 %v1167_v11, %v1080_v8  ;;  %v941_v16 = vor.u32 %v1130_v12, %v938_v13  ;;  %v1008_v17 = vld [vmem:[%s1600_s2 + $0xb0] sm:$0xf]  ;;  %v1128_v22 = vld [vmem:[%s1600_s2 + $0x14] sm:$0xf]  ;;  %v1000_v26 = vld [vmem:[%s1600_s2 + $0xa0] sm:$0xf] }
  0x1c   : > { %673 = vmatpush.bf16.msra.mxu1 %v953_v18  ;;  %709 = vmatpush.bf16.msra.mxu3 %v1097_v59  ;;  %v1149_v18 = vld [vmem:[%s1600_s2 + $0xb4] sm:$0xf0]  ;;  %v1072_v20 = vld [vmem:[%s1600_s2 + $0x130] sm:$0xf]  ;;  %v1147_v27 = vld [vmem:[%s1600_s2 + $0xa4] sm:$0xf0] }
  0x1d   : > { %v1009_v19 = vor.u32 %v1149_v18, %v1008_v17  ;;  %v1001_v30 = vor.u32 %v1147_v27, %v1000_v26  ;;  %v1145_v41 = vld [vmem:[%s1600_s2 + $0x94] sm:$0xf0]  ;;  %v1056_v42 = vld [vmem:[%s1600_s2 + $0x110] sm:$0xf]  ;;  %v984_v46 = vld [vmem:[%s1600_s2 + $0x80] sm:$0xf] }
  0x1e   : > { %v1161_v44 = vld [vmem:[%s1600_s2 + $0x114] sm:$0xf0]  ;;  %v1143_v47 = vld [vmem:[%s1600_s2 + $0x84] sm:$0xf0]  ;;  %v1048_v48 = vld [vmem:[%s1600_s2 + $0x100] sm:$0xf] }
  0x1f   : > { %691 = vmatpush.bf16.msra.mxu2 %v1025_v63  ;;  %v1057_v45 = vor.u32 %v1161_v44, %v1056_v42  ;;  %v985_v50 = vor.u32 %v1143_v47, %v984_v46  ;;  %v1159_v51 = vld [vmem:[%s1600_s2 + $0x104] sm:$0xf0]  ;;  %v1156_v54 = vld [vmem:[%s1600_s2 + $0xf4] sm:$0xf]  ;;  %v1042_v55 = vld [vmem:[%s1600_s2 + $0xf8] sm:$0xf0] }
  0x20   : > { %674 = vmatpush.bf16.msra.mxu1 %v945_v21  ;;  %v1165_v21 = vld [vmem:[%s1600_s2 + $0x134] sm:$0xf0]  ;;  %v1045_v56 = vor.u32 %v1156_v54, %v1042_v55  ;;  %v1172_v57 = vld [vmem:[%s1600_s2 + $0x174] sm:$0xf]  ;;  %v1154_v59 = vld [vmem:[%s1600_s2 + $0xe4] sm:$0xf] }
  0x21   : > { %v1073_v23 = vor.u32 %v1165_v21, %v1072_v20  ;;  %v1170_v61 = vld [vmem:[%s1600_s2 + $0x164] sm:$0xf]  ;;  %v1018_v12 = vld [vmem:[%s1600_s2 + $0xc8] sm:$0xf0]  ;;  %v1010_v20 = vld [vmem:[%s1600_s2 + $0xb8] sm:$0xf0] }
  0x22   : > { %889 = vmatmul.msk.bf16.gmra.mxu0 %vm254_vm0, %v1114_v2  ;;  %v1132_v2 = vld [vmem:[%s1600_s2 + $0x34] sm:$0xf]  ;;  %v1150_v11 = vld [vmem:[%s1600_s2 + $0xc4] sm:$0xf]  ;;  %v1002_v26 = vld [vmem:[%s1600_s2 + $0xa8] sm:$0xf0] }
  0x23   : > { %v1166_v13 = vld [vmem:[%s1600_s2 + $0x144] sm:$0xf] }
  0x24   : > { %675 = vmatpush.bf16.msra.mxu1 %v937_v25  ;;  %v1162_v27 = vld [vmem:[%s1600_s2 + $0x124] sm:$0xf] }
  0x25   : > { %v1142_v42 = vld [vmem:[%s1600_s2 + $0x84] sm:$0xf] }
  0x26   : > { %v1158_v44 = vld [vmem:[%s1600_s2 + $0x104] sm:$0xf] }
  0x28   : > { %676 = vmatpush.bf16.msra.mxu1 %v929_v28  ;;  %v1064_v28 = vld [vmem:[%s1600_s2 + $0x120] sm:$0xf] }
  0x2c   : > { %677 = vmatpush.bf16.msra.mxu1 %v921_v32  ;;  %v1126_v32 = vld [vmem:[%s1600_s2 + $0x4] sm:$0xf] }
  0x30   : > { %727 = vmatpush.bf16.msrb.mxu1 %v981_v36 }
  0x32   : > { %890 = vmatmul.msk.bf16.gmra.mxu0 %vm254_vm0, %v1115_v3  ;;  %v1089_v3 = vor.u32 %v1169_v1, %v1088_v0  ;;  %v1098_v0 = vld [vmem:[%s1600_s2 + $0x168] sm:$0xf0] }
  0x33   : > { %v1101_v1 = vor.u32 %v1170_v61, %v1098_v0 }
  0x34   : > { %728 = vmatpush.bf16.msrb.mxu1 %v973_v40  ;;  %710 = vmatpush.bf16.msra.mxu3 %v1089_v3  ;;  %v992_v40 = vld [vmem:[%s1600_s2 + $0x90] sm:$0xf] }
  0x35   : > { %v993_v43 = vor.u32 %v1145_v41, %v992_v40 }
  0x38   : > { %729 = vmatpush.bf16.msrb.mxu1 %v965_v49  ;;  %711 = vmatpush.bf16.msra.mxu3 %v1081_v15  ;;  %v1082_v15 = vld [vmem:[%s1600_s2 + $0x148] sm:$0xf0] }
  0x3c   : > { %730 = vmatpush.bf16.msrb.mxu1 %v957_v60  ;;  %712 = vmatpush.bf16.msra.mxu3 %v1073_v23  ;;  %v1034_v60 = vld [vmem:[%s1600_s2 + $0xe8] sm:$0xf0]  ;;  %v1074_v23 = vld [vmem:[%s1600_s2 + $0x138] sm:$0xf0] }
  0x3d   : > { %v1037_v63 = vor.u32 %v1154_v59, %v1034_v60 }
  0x42   : > { %891 = vmatmul.msk.bf16.gmra.mxu0 %vm254_vm0, %v1116_v4  ;;  %v946_v4 = vld [vmem:[%s1600_s2 + $0x38] sm:$0xf0] }
  0x52   : > { %892 = vmatmul.msk.bf16.gmra.mxu0 %vm254_vm0, %v1117_v5  ;;  %v949_v5 = vor.u32 %v1132_v2, %v946_v4 }
  0x54   : > { %731 = vmatpush.bf16.msrb.mxu1 %v949_v5  ;;  %v1152_v5 = vld [vmem:[%s1600_s2 + $0xd4] sm:$0xf] }
  0x58   : > { %732 = vmatpush.bf16.msrb.mxu1 %v941_v16  ;;  %v1085_v16 = vor.u32 %v1166_v13, %v1082_v15 }
  0x62   : > { %893 = vmatmul.msk.bf16.gmra.mxu0 %vm254_vm0, %v1118_v6  ;;  %v1016_v6 = vld [vmem:[%s1600_s2 + $0xc0] sm:$0xf] }
  0x63   : > { %v1017_v10 = vor.u32 %v1151_v7, %v1016_v6  ;;  %v1026_v6 = vld [vmem:[%s1600_s2 + $0xd8] sm:$0xf0]  ;;  %v1168_v7 = vld [vmem:[%s1600_s2 + $0x154] sm:$0xf] }
  0x64   : > { %v1029_v8 = vor.u32 %v1152_v5, %v1026_v6 }
  0x65   : > { %692 = vmatpush.bf16.msra.mxu2 %v1017_v10 }
  0x69   : > { %693 = vmatpush.bf16.msra.mxu2 %v1009_v19  ;;  %v1148_v19 = vld [vmem:[%s1600_s2 + $0xb4] sm:$0xf] }
  0x6a   : > { %v1013_v21 = vor.u32 %v1148_v19, %v1010_v20 }
  0x6d   : > { %694 = vmatpush.bf16.msra.mxu2 %v1001_v30  ;;  %v1066_v30 = vld [vmem:[%s1600_s2 + $0x128] sm:$0xf0] }
  0x71   : > { %695 = vmatpush.bf16.msra.mxu2 %v993_v43  ;;  %v986_v43 = vld [vmem:[%s1600_s2 + $0x88] sm:$0xf0] }
  0x75   : > { %696 = vmatpush.bf16.msra.mxu2 %v985_v50 }
  0x79   : > { %746 = vmatpush.bf16.msrb.mxu2 %v1045_v56 }
  0x7d   : > { %747 = vmatpush.bf16.msrb.mxu2 %v1037_v63  ;;  %v392_v63 = vld [vmem:[%s1601_s3] sm:$0x3] }
  0x7e   : > { %v394_v0 = vperm.slane %v392_v63, 0 }
  0x81   : > { %748 = vmatpush.bf16.msrb.mxu2 %v1029_v8 }
  0x8f   : > { %v1305_v24 = vpop.f32.mrf.mxu0 }
  0x97   : > { %v284_v31 = vpop.f32.mrf.mxu0 }
  0x98   : > { %v313_v33 = vpack.c.bf16 %v284_v31, %v284_v31  ;;  %v1163_v31 = vld [vmem:[%s1600_s2 + $0x124] sm:$0xf0] }
  0x99   : > { %v1065_v34 = vor.u32 %v1163_v31, %v1064_v28  ;;  %v1069_v31 = vor.u32 %v1162_v27, %v1066_v30 }
  0x9a   : > { %325 = vst [vmem:[#allocation2 + $0xc] sm:$0xf] %v313_v33  ;;  %v922_v33 = vld [vmem:[%s1600_s2 + $0x8] sm:$0xf0] }
  0x9b   : > { %v925_v35 = vor.u32 %v1126_v32, %v922_v33  ;;  %713 = vmatpush.bf16.msra.mxu3 %v1065_v34  ;;  %v1144_v32 = vld [vmem:[%s1600_s2 + $0x94] sm:$0xf]  ;;  %v994_v33 = vld [vmem:[%s1600_s2 + $0x98] sm:$0xf0] }
  0x9c   : > { %v997_v40 = vor.u32 %v1144_v32, %v994_v33 }
  0x9f   : > { %v1331_v39 = vpop.f32.mrf.mxu0  ;;  %714 = vmatpush.bf16.msra.mxu3 %v1057_v45  ;;  %v989_v45 = vor.u32 %v1142_v42, %v986_v43 }
  0xa1   : > { %v1121_v37 = vld [vmem:[#allocation2 + $0x8] sm:$0xf0] }
  0xa7   : > { %v289_v53 = vpop.f32.mrf.mxu0 }
  0xa8   : > { %v315_v58 = vpack.c.bf16 %v289_v53, %v289_v53  ;;  %v1049_v53 = vor.u32 %v1159_v51, %v1048_v48 }
  0xaa   : > { %327 = vst [vmem:[#allocation2 + $0x24] sm:$0xf] %v315_v58  ;;  %715 = vmatpush.bf16.msra.mxu3 %v1049_v53 }
  0xaf   : > { %v292_v9 = vpop.f32.mrf.mxu0 }
  0xb0   : > { %v1177_v14 = vpack.c.bf16 %v292_v9, %v1305_v24  ;;  %v930_v24 = vld [vmem:[%s1600_s2 + $0x18] sm:$0xf0] }
  0xb1   : > { %v933_v25 = vor.u32 %v1128_v22, %v930_v24  ;;  %v1124_v3 = vld [vmem:[#allocation2 + $0x20] sm:$0xf0]  ;;  %v1090_v9 = vld [vmem:[%s1600_s2 + $0x158] sm:$0xf0]  ;;  %v1164_v22 = vld [vmem:[%s1600_s2 + $0x134] sm:$0xf] }
  0xb2   : > { %1178 = vst [vmem:[#allocation2] sm:$0xff] %v1177_v14   ;;  %v1093_v10 = vor.u32 %v1168_v7, %v1090_v9  ;;  %v1021_v14 = vor.u32 %v1150_v11, %v1018_v12  ;;  %v1077_v24 = vor.u32 %v1164_v22, %v1074_v23  ;;  %v395_v23 = vperm.slane %v392_v63, 1 }
  0xb3   : > { %733 = vmatpush.bf16.msrb.mxu1 %v933_v25  ;;  %v1146_v25 = vld [vmem:[%s1600_s2 + $0xa4] sm:$0xf] }
  0xb4   : > { %749 = vmatpush.bf16.msrb.mxu2 %v1021_v14  ;;  %v1005_v28 = vor.u32 %v1146_v25, %v1002_v26 }
  0xb7   : > { %v1433_v29 = vpop.f32.mrf.mxu0  ;;  %734 = vmatpush.bf16.msrb.mxu1 %v925_v35  ;;  %v1160_v35 = vld [vmem:[%s1600_s2 + $0x114] sm:$0xf] }
  0xb8   : > { %750 = vmatpush.bf16.msrb.mxu2 %v1013_v21 }
  0xb9   : > { %v896_v36 = vld [vmem:[#allocation2] sm:$0xf] }
  0xba   : > { %v1444_v38 = vor.u32 %v1121_v37, %v896_v36  ;;  %v1058_v36 = vld [vmem:[%s1600_s2 + $0x118] sm:$0xf0] }
  0xbb   : > { %v1061_v41 = vor.u32 %v1160_v35, %v1058_v36 }
  0xbc   : > { %678 = vmatmul.bf16.vlgmr.msra.gmra.mxu1 %v1444_v38  ;;  %751 = vmatpush.bf16.msrb.mxu2 %v1005_v28 }
  0xbf   : > { %v297_v49 = vpop.f32.mrf.mxu0 }
  0xc0   : > { %v1182_v52 = vpack.c.bf16 %v297_v49, %v1331_v39  ;;  %v1106_v39 = vld [vmem:[%s1600_s2 + $0x178] sm:$0xf0]  ;;  %752 = vmatpush.bf16.msrb.mxu2 %v997_v40  ;;  %v1120_v49 = vld [vmem:[#allocation2 + $0x4] sm:$0xf] }
  0xc1   : > { %v1109_v58 = vor.u32 %v1172_v57, %v1106_v39 }
  0xc2   : > { %1194 = vst [vmem:[#allocation2 + $0x18] sm:$0xff] %v1182_v52  }
  0xc3   : > { %765 = vmatpush.bf16.msrb.mxu3 %v1109_v58 }
  0xc4   : > { %753 = vmatpush.bf16.msrb.mxu2 %v989_v45 }
  0xc7   : > { %v1493_v62 = vpop.f32.mrf.mxu0  ;;  %766 = vmatpush.bf16.msrb.mxu3 %v1101_v1 }
  0xc9   : > { %v908_v2 = vld [vmem:[#allocation2 + $0x18] sm:$0xf]  ;;  %v1123_v56 = vld [vmem:[#allocation2 + $0x1c] sm:$0xf] }
  0xca   : > { %v1498_v4 = vor.u32 %v1124_v3, %v908_v2 }
  0xcb   : > { %767 = vmatpush.bf16.msrb.mxu3 %v1093_v10 }
  0xcc   : > { %683 = vmatmul.bf16.gmra.mxu1 %v1498_v4 }
  0xcf   : > { %v302_v17 = vpop.f32.mrf.mxu0  ;;  %768 = vmatpush.bf16.msrb.mxu3 %v1085_v16 }
  0xd0   : > { %v320_v18 = vpack.c.bf16 %v302_v17, %v302_v17 }
  0xd2   : > { %332 = vst [vmem:[#allocation2 + $0x8] sm:$0xf] %v320_v18 }
  0xd3   : > { %769 = vmatpush.bf16.msrb.mxu3 %v1077_v24 }
  0xd7   : > { %v304_v34 = vpop.f32.mrf.mxu0  ;;  %770 = vmatpush.bf16.msrb.mxu3 %v1069_v31 }
  0xd8   : > { %v1187_v37 = vpack.c.bf16 %v304_v34, %v1433_v29  ;;  %v1050_v29 = vld [vmem:[%s1600_s2 + $0x108] sm:$0xf0] }
  0xd9   : > { %v1053_v46 = vor.u32 %v1158_v44, %v1050_v29  ;;  %v904_v51 = vld [vmem:[#allocation2 + $0x8] sm:$0xf] }
  0xda   : > { %1195 = vst [vmem:[#allocation2 + $0x10] sm:$0xff] %v1187_v37  }
  0xdb   : > { %771 = vmatpush.bf16.msrb.mxu3 %v1061_v41 }
  0xdc   : > { %735 = vmatmul.bf16.vlgmr.msrb.gmra.mxu1 %v1444_v38 }
  0xdf   : > { %v307_v47 = vpop.f32.mrf.mxu0  ;;  %772 = vmatpush.bf16.msrb.mxu3 %v1053_v46 }
  0xe0   : > { %v322_v48 = vpack.c.bf16 %v307_v47, %v307_v47 }
  0xe1   : > { %v898_v50 = vld [vmem:[#allocation2 + $0xc] sm:$0xf0]  ;;  %v1122_v52 = vld [vmem:[#allocation2 + $0x10] sm:$0xf0] }
  0xe2   : > { %334 = vst [vmem:[#allocation2 + $0x20] sm:$0xf] %v322_v48  ;;  %v901_v53 = vor.u32 %v1120_v49, %v898_v50  ;;  %v905_v54 = vor.u32 %v1122_v52, %v904_v51 }
  0xe4   : > { %697 = vmatmul.bf16.vlgmr.msra.gmra.mxu2 %v901_v53  ;;  %716 = vmatmul.bf16.vlgmr.msra.gmra.mxu3 %v905_v54 }
  0xe7   : > { %v309_v55 = vpop.f32.mrf.mxu0 }
  0xe8   : > { %v1192_v38 = vpack.c.bf16 %v309_v55, %v1493_v62 }
  0xe9   : > { %v916_v39 = vld [vmem:[#allocation2 + $0x20] sm:$0xf] }
  0xea   : > { %1196 = vst [vmem:[#allocation2 + $0x28] sm:$0xff] %v1192_v38  }
  0xec   : > { %740 = vmatmul.bf16.gmra.mxu1 %v1498_v4 }
  0xf1   : > { %v910_v57 = vld [vmem:[#allocation2 + $0x24] sm:$0xf0]  ;;  %v1125_v58 = vld [vmem:[#allocation2 + $0x28] sm:$0xf0] }
  0xf2   : > { %v913_v59 = vor.u32 %v1123_v56, %v910_v57  ;;  %v917_v60 = vor.u32 %v1125_v58, %v916_v39 }
  0xf4   : > { %702 = vmatmul.bf16.gmra.mxu2 %v913_v59  ;;  %721 = vmatmul.bf16.gmra.mxu3 %v917_v60 }
 0x104   : > { %754 = vmatmul.bf16.vlgmr.msrb.gmra.mxu2 %v901_v53  ;;  %773 = vmatmul.bf16.vlgmr.msrb.gmra.mxu3 %v905_v54 }
 0x114   : > { %759 = vmatmul.bf16.gmra.mxu2 %v913_v59  ;;  %778 = vmatmul.bf16.gmra.mxu3 %v917_v60 }
 0x139   : > { %v679_v61 = vpop.f32.mrf.mxu1 }
 0x13a   : > { %v680_v1 = vadd.f32 %v679_v61, %v394_v0 }
 0x141   : > { %v681_v62 = vpop.f32.mrf.mxu1 }
 0x142   : > { %v682_v7 = vadd.f32 %v681_v62, %v394_v0 }
 0x149   : > { %v684_v4 = vpop.f32.mrf.mxu1 }
 0x14a   : > { %v685_v13 = vadd.f32 %v684_v4, %v394_v0 }
 0x151   : > { %v686_v11 = vpop.f32.mrf.mxu1 }
 0x152   : > { %v687_v19 = vadd.f32 %v686_v11, %v394_v0 }
 0x159   : > { %v736_v18 = vpop.f32.mrf.mxu1 }
 0x15a   : > { %v737_v25 = vadd.f32 %v736_v18, %v395_v23 }
 0x161   : > { %v738_v26 = vpop.f32.mrf.mxu1 }
 0x162   : > { %v739_v32 = vadd.f32 %v738_v26, %v395_v23 }
 0x167   : > { %v698_v2 = vpop.f32.mrf.mxu2  ;;  %v717_v3 = vpop.f32.mrf.mxu3 }
 0x168   : > { %v699_v5 = vadd.f32 %v698_v2, %v680_v1 }
 0x169   : > { %v741_v36 = vpop.f32.mrf.mxu1 }
 0x16a   : > { %v718_v6 = vadd.f32 %v717_v3, %v699_v5  ;;  %v742_v40 = vadd.f32 %v741_v36, %v395_v23 }
 0x16c   : > { %784 = vst [vmem:[%s1585_s14] sm:$0xff] %v718_v6 }
 0x16f   : > { %v700_v8 = vpop.f32.mrf.mxu2  ;;  %v719_v9 = vpop.f32.mrf.mxu3 }
 0x170   : > { %v701_v10 = vadd.f32 %v700_v8, %v682_v7 }
 0x171   : > { %v743_v29 = vpop.f32.mrf.mxu1 }
 0x172   : > { %v720_v12 = vadd.f32 %v719_v9, %v701_v10  ;;  %v744_v45 = vadd.f32 %v743_v29, %v395_v23 }
 0x174   : > { %786 = vst [vmem:[%s1585_s14 + $0x10] sm:$0xff] %v720_v12 }
 0x177   : > { %v703_v14 = vpop.f32.mrf.mxu2  ;;  %v722_v15 = vpop.f32.mrf.mxu3 }
 0x178   : > { %v704_v16 = vadd.f32 %v703_v14, %v685_v13 }
 0x17a   : > { %v723_v17 = vadd.f32 %v722_v15, %v704_v16 }
 0x17c   : > { %788 = vst [vmem:[%s1585_s14 + $0x20] sm:$0xff] %v723_v17 }
 0x17f   : > { %v705_v20 = vpop.f32.mrf.mxu2  ;;  %v724_v21 = vpop.f32.mrf.mxu3 }
 0x180   : > { %v706_v22 = vadd.f32 %v705_v20, %v687_v19 }
 0x182   : > { %v725_v24 = vadd.f32 %v724_v21, %v706_v22 }
 0x184   : > { %790 = vst [vmem:[%s1585_s14 + $0x30] sm:$0xff] %v725_v24 }
 0x187   : > { %v755_v27 = vpop.f32.mrf.mxu2  ;;  %v774_v28 = vpop.f32.mrf.mxu3 }
 0x188   : > { %v756_v30 = vadd.f32 %v755_v27, %v737_v25 }
 0x18a   : > { %v775_v31 = vadd.f32 %v774_v28, %v756_v30 }
 0x18c   : > { %785 = vst [vmem:[%s1585_s14 + $0x8] sm:$0xff] %v775_v31 }
 0x18f   : > { %v757_v33 = vpop.f32.mrf.mxu2  ;;  %v776_v34 = vpop.f32.mrf.mxu3 }
 0x190   : > { %v758_v35 = vadd.f32 %v757_v33, %v739_v32 }
 0x192   : > { %v777_v37 = vadd.f32 %v776_v34, %v758_v35 }
 0x194   : > { %787 = vst [vmem:[%s1585_s14 + $0x18] sm:$0xff] %v777_v37 }
 0x197   : > { %v760_v41 = vpop.f32.mrf.mxu2  ;;  %v779_v42 = vpop.f32.mrf.mxu3 }
 0x198   : > { %v761_v43 = vadd.f32 %v760_v41, %v742_v40 }
 0x19a   : > { %v780_v44 = vadd.f32 %v779_v42, %v761_v43 }
 0x19c   : > { %789 = vst [vmem:[%s1585_s14 + $0x28] sm:$0xff] %v780_v44 }
 0x19f   : > { %v762_v46 = vpop.f32.mrf.mxu2  ;;  %v781_v48 = vpop.f32.mrf.mxu3 }
 0x1a0   : > { %v763_v47 = vadd.f32 %v762_v46, %v744_v45 }
 0x1a2   : > { %v782_v49 = vadd.f32 %v781_v48, %v763_v47 }
 0x1a4   : > { %791 = vst [vmem:[%s1585_s14 + $0x38] sm:$0xff] %v782_v49 }
 0x1a5 PF: > { %s14_s15 = sadd.s32 1, %s1211_s15  }
 0x1a6   : > { %p11_p5 = scmp.ge.s32.totalorder %s14_s15, 4  }
 0x1a8   :  { %13 = sbr.rel (!%p11_p5) target bundleno = 1 (0x1), region = 66 }

</bundles_post_ra>
